<compile_context>
chip_gen: v5e
topology: v5e:2x2
jax: 0.10.0
libtpu: 0.0.40
codegen_flags: <defaults>
</compile_context>

<pallas_src>
import functools

import jax
import jax.numpy as jnp
from jax.experimental import pallas as pl
from jax.experimental.pallas import tpu as pltpu

_EPS = 1e-5
_LANE = 128
_VMEM_GUARD_BYTES = 24 * 1024 * 1024  # stay well under v7x's 32 MiB scoped-VMEM default


def _round_up(n, m):
    return (n + m - 1) // m * m


def _mlp_kernel(*refs, num_layers, out_dim, npads):
    x_ref = refs[0]
    w_refs = refs[1:1 + num_layers]
    gamma_ref = refs[1 + num_layers]
    beta_ref = refs[2 + num_layers]
    out_ref = refs[3 + num_layers]

    batch = x_ref.shape[0]
    inv_b = 1.0 / batch

    h = x_ref[...]                                  # (B, Kpad0) f32, padded lanes zero
    for i in range(num_layers):
        npad = npads[i]
        w = w_refs[i][...]                          # (Kpad_i, Npad_i)
        # Linear on the MXU. Bias omitted: training-mode BatchNorm subtracts the
        # batch mean, which cancels any per-feature bias added before the norm.
        h = jnp.dot(h.astype(w.dtype), w, preferred_element_type=jnp.float32)

        # Two-pass batch statistics (biased variance, eps=1e-5), per feature.
        mean = jnp.sum(h, axis=0, keepdims=True) * inv_b
        d = h - mean
        var = jnp.sum(d * d, axis=0, keepdims=True) * inv_b

        g = gamma_ref[i:i + 1, 0:npad]              # (1, Npad_i), static lane-aligned slice
        b = beta_ref[i:i + 1, 0:npad]
        scale = g * jax.lax.rsqrt(var + _EPS)       # rsqrt goes to the EUP (free slot)

        # BN + ReLU. Padded lanes: gamma/beta pads are zero -> stay exactly zero.
        h = jnp.maximum(d * scale + b, 0.0)

    # log_softmax over dim=1; mask the zero-padded lanes out of max/sum.
    col = jax.lax.broadcasted_iota(jnp.int32, h.shape, 1)
    h = jnp.where(col < out_dim, h, -1e30)
    m = jnp.max(h, axis=1, keepdims=True)
    sh = h - m
    lse = jnp.log(jnp.sum(jnp.exp(sh), axis=1, keepdims=True))
    out_ref[...] = sh - lse


def pack_params(params, weights_dtype=jnp.float32):
    """Pack/pad the parameters ONCE (weights are parameters, not activations).

    `params` is a list of (w, b, gamma, beta); w has shape (fan_in, fan_out).
    The Linear bias b is intentionally dropped: training-mode BatchNorm cancels it.
    weights_dtype=jnp.bfloat16 halves weight DMA bytes (helps most on v5e HBM) but
    is borderline against a 1e-3 tolerance, so f32 is the default.
    """
    dims = [params[0][0].shape[0]] + [w.shape[1] for (w, _, _, _) in params]
    kpads = [_round_up(d, _LANE) for d in dims[:-1]]
    npads = [_round_up(d, _LANE) for d in dims[1:]]
    fmax = max(npads)

    w_list = tuple(
        jnp.pad(w, ((0, kpads[i] - w.shape[0]), (0, npads[i] - w.shape[1])))
        .astype(weights_dtype)
        for i, (w, _, _, _) in enumerate(params)
    )
    gamma_slab = jnp.stack(
        [jnp.pad(g, (0, fmax - g.shape[0])) for (_, _, g, _) in params])
    beta_slab = jnp.stack(
        [jnp.pad(b, (0, fmax - b.shape[0])) for (_, _, _, b) in params])

    return dict(w=w_list, gamma=gamma_slab, beta=beta_slab,
                in_pad=kpads[0], npads=tuple(npads), out_dim=dims[-1])


def mlp_forward(x, packed):
    """Fused MLP forward; `packed` comes from pack_params() (built once at init)."""
    batch = x.shape[0]
    num_layers = len(packed["w"])
    npads = packed["npads"]
    out_dim = packed["out_dim"]

    # VMEM budget guard: weights, activations and output are all resident.
    resident = (batch * packed["in_pad"] * 4
                + batch * npads[-1] * 4
                + 2 * batch * max(npads) * 4
                + sum(int(w.nbytes) for w in packed["w"])
                + int(packed["gamma"].nbytes) + int(packed["beta"].nbytes))
    if resident > _VMEM_GUARD_BYTES:
        # TODO(synk): for wider layers, switch to a grid=(num_layers,) "arbitrary"
        # pipeline with a per-layer (Kpad, Npad) weight BlockSpec and an h-carry
        # VMEM scratch so only two double-buffered weight tiles are resident.
        raise ValueError(
            f"Packed MLP ({resident / 2**20:.1f} MiB) exceeds the VMEM budget "
            "for the gridless kernel.")

    x_pad = jnp.pad(x.astype(jnp.float32),
                    ((0, 0), (0, packed["in_pad"] - x.shape[1])))

    kernel = functools.partial(_mlp_kernel, num_layers=num_layers,
                               out_dim=out_dim, npads=npads)
    out_pad = pl.pallas_call(
        kernel,
        out_shape=jax.ShapeDtypeStruct((batch, npads[-1]), jnp.float32),
        in_specs=[pl.BlockSpec(memory_space=pltpu.MemorySpace.VMEM)]
                 * (num_layers + 3),
        out_specs=pl.BlockSpec(memory_space=pltpu.MemorySpace.VMEM),
        # Single TensorCore on purpose: serial layer chain + tiny batch means there
        # is no parallel grid axis worth sharding across v7x's two cores.
    )(x_pad, *packed["w"], packed["gamma"], packed["beta"])
    return out_pad[:, :out_dim]


def make_layer_dims(input_size, output_size):
    return [
        input_size,
        input_size * 5,
        input_size * 10,
        input_size * 15,
        input_size * 20,
        output_size // 5,
        output_size // 3,
        output_size,
    ]


def init_params(key, dims):
    """PyTorch-default-like init: Linear U(-1/sqrt(fan_in), 1/sqrt(fan_in)); BN gamma=1, beta=0."""
    params = []
    for i in range(len(dims) - 1):
        fan_in, fan_out = dims[i], dims[i + 1]
        key, kw, kb = jax.random.split(key, 3)
        bound = 1.0 / (fan_in ** 0.5)
        w = jax.random.uniform(kw, (fan_in, fan_out), jnp.float32, -bound, bound)
        b = jax.random.uniform(kb, (fan_out,), jnp.float32, -bound, bound)
        gamma = jnp.ones((fan_out,), jnp.float32)
        beta = jnp.zeros((fan_out,), jnp.float32)
        params.append((w, b, gamma, beta))
    return params


def reference_forward(x, params):
    """Pure-JAX reference matching the PyTorch module (training-mode BN, with bias)."""
    h = x.astype(jnp.float32)
    for (w, b, g, be) in params:
        h = h @ w + b
        mean = jnp.mean(h, axis=0, keepdims=True)
        var = jnp.mean((h - mean) ** 2, axis=0, keepdims=True)
        h = (h - mean) * jax.lax.rsqrt(var + _EPS) * g + be
        h = jnp.maximum(h, 0.0)
    return jax.nn.log_softmax(h, axis=1)


if __name__ == "__main__":
    input_size = 8
    output_size = 30
    batch = 8

    dims = make_layer_dims(input_size, output_size)  # [8, 40, 80, 120, 160, 6, 10, 30]

    key = jax.random.PRNGKey(0)
    key, kx = jax.random.split(key)
    x = jax.random.normal(kx, (batch, input_size), jnp.float32)
    params = init_params(key, dims)

    packed = pack_params(params)          # packed ONCE, reused for every forward call
    out = jax.block_until_ready(mlp_forward(x, packed))
    ref = reference_forward(x, params)

    assert out.shape == (batch, output_size)
    err = float(jnp.max(jnp.abs(out - ref)))
    assert jnp.allclose(out, ref, atol=1e-3, rtol=1e-3), err

    print("KERNEL_OK")
</pallas_src>

<mosaic_0001>
module attributes {stable_mosaic.version = 11 : i64} {
  func.func @_mlp_kernel(%arg0: memref<8x128xf32, #tpu.memory_space<vmem>>, %arg1: memref<128x128xf32, #tpu.memory_space<vmem>>, %arg2: memref<128x128xf32, #tpu.memory_space<vmem>>, %arg3: memref<128x128xf32, #tpu.memory_space<vmem>>, %arg4: memref<128x256xf32, #tpu.memory_space<vmem>>, %arg5: memref<256x128xf32, #tpu.memory_space<vmem>>, %arg6: memref<128x128xf32, #tpu.memory_space<vmem>>, %arg7: memref<128x128xf32, #tpu.memory_space<vmem>>, %arg8: memref<7x256xf32, #tpu.memory_space<vmem>>, %arg9: memref<7x256xf32, #tpu.memory_space<vmem>>, %arg10: memref<8x128xf32, #tpu.memory_space<vmem>>) attributes {dimension_semantics = [], scalar_prefetch = 0 : i64, scratch_operands = 0 : i64, tpu.core_type = #tpu.core_type<tc>} {
    %c0 = arith.constant 0 : index
    %c0_0 = arith.constant 0 : index
    %0 = vector.load %arg0[%c0, %c0_0] : memref<8x128xf32, #tpu.memory_space<vmem>>, vector<8x128xf32>
    %c0_1 = arith.constant 0 : index
    %c0_2 = arith.constant 0 : index
    %1 = vector.load %arg1[%c0_1, %c0_2] : memref<128x128xf32, #tpu.memory_space<vmem>>, vector<128x128xf32>
    %cst = arith.constant dense<0.000000e+00> : vector<8x128xf32>
    %2 = tpu.matmul %0, %1, %cst {dimension_numbers = #tpu.dot_dimension_numbers<[1], [0], [0], [1], [0, 0, 1, 1], [], []>} : vector<8x128xf32>, vector<128x128xf32>, vector<8x128xf32> -> vector<8x128xf32>
    %cst_3 = arith.constant dense<0.000000e+00> : vector<128xf32>
    %3 = vector.multi_reduction <add>, %2, %cst_3 [0] : vector<8x128xf32> to vector<128xf32>
    %4 = vector.shape_cast %3 : vector<128xf32> to vector<1x128xf32>
    %cst_4 = arith.constant 1.250000e-01 : f32
    %5 = vector.broadcast %cst_4 : f32 to vector<1x128xf32>
    %6 = arith.mulf %4, %5 : vector<1x128xf32>
    %7 = vector.broadcast %6 : vector<1x128xf32> to vector<8x128xf32>
    %8 = arith.subf %2, %7 : vector<8x128xf32>
    %9 = arith.mulf %8, %8 : vector<8x128xf32>
    %cst_5 = arith.constant dense<0.000000e+00> : vector<128xf32>
    %10 = vector.multi_reduction <add>, %9, %cst_5 [0] : vector<8x128xf32> to vector<128xf32>
    %11 = vector.shape_cast %10 : vector<128xf32> to vector<1x128xf32>
    %cst_6 = arith.constant 1.250000e-01 : f32
    %12 = vector.broadcast %cst_6 : f32 to vector<1x128xf32>
    %13 = arith.mulf %11, %12 : vector<1x128xf32>
    %c0_7 = arith.constant 0 : index
    %c0_8 = arith.constant 0 : index
    %14 = vector.load %arg8[%c0_7, %c0_8] : memref<7x256xf32, #tpu.memory_space<vmem>>, vector<1x128xf32>
    %c0_9 = arith.constant 0 : index
    %c0_10 = arith.constant 0 : index
    %15 = vector.load %arg9[%c0_9, %c0_10] : memref<7x256xf32, #tpu.memory_space<vmem>>, vector<1x128xf32>
    %cst_11 = arith.constant 9.99999974E-6 : f32
    %16 = vector.broadcast %cst_11 : f32 to vector<1x128xf32>
    %17 = arith.addf %13, %16 : vector<1x128xf32>
    %18 = math.rsqrt %17 : vector<1x128xf32>
    %19 = arith.mulf %14, %18 : vector<1x128xf32>
    %20 = vector.broadcast %19 : vector<1x128xf32> to vector<8x128xf32>
    %21 = arith.mulf %8, %20 : vector<8x128xf32>
    %22 = vector.broadcast %15 : vector<1x128xf32> to vector<8x128xf32>
    %23 = arith.addf %21, %22 : vector<8x128xf32>
    %cst_12 = arith.constant 0.000000e+00 : f32
    %24 = vector.broadcast %cst_12 : f32 to vector<8x128xf32>
    %25 = arith.maximumf %23, %24 : vector<8x128xf32>
    %c0_13 = arith.constant 0 : index
    %c0_14 = arith.constant 0 : index
    %26 = vector.load %arg2[%c0_13, %c0_14] : memref<128x128xf32, #tpu.memory_space<vmem>>, vector<128x128xf32>
    %cst_15 = arith.constant dense<0.000000e+00> : vector<8x128xf32>
    %27 = tpu.matmul %25, %26, %cst_15 {dimension_numbers = #tpu.dot_dimension_numbers<[1], [0], [0], [1], [0, 0, 1, 1], [], []>} : vector<8x128xf32>, vector<128x128xf32>, vector<8x128xf32> -> vector<8x128xf32>
    %cst_16 = arith.constant dense<0.000000e+00> : vector<128xf32>
    %28 = vector.multi_reduction <add>, %27, %cst_16 [0] : vector<8x128xf32> to vector<128xf32>
    %29 = vector.shape_cast %28 : vector<128xf32> to vector<1x128xf32>
    %cst_17 = arith.constant 1.250000e-01 : f32
    %30 = vector.broadcast %cst_17 : f32 to vector<1x128xf32>
    %31 = arith.mulf %29, %30 : vector<1x128xf32>
    %32 = vector.broadcast %31 : vector<1x128xf32> to vector<8x128xf32>
    %33 = arith.subf %27, %32 : vector<8x128xf32>
    %34 = arith.mulf %33, %33 : vector<8x128xf32>
    %cst_18 = arith.constant dense<0.000000e+00> : vector<128xf32>
    %35 = vector.multi_reduction <add>, %34, %cst_18 [0] : vector<8x128xf32> to vector<128xf32>
    %36 = vector.shape_cast %35 : vector<128xf32> to vector<1x128xf32>
    %cst_19 = arith.constant 1.250000e-01 : f32
    %37 = vector.broadcast %cst_19 : f32 to vector<1x128xf32>
    %38 = arith.mulf %36, %37 : vector<1x128xf32>
    %c1 = arith.constant 1 : index
    %c0_20 = arith.constant 0 : index
    %39 = vector.load %arg8[%c1, %c0_20] : memref<7x256xf32, #tpu.memory_space<vmem>>, vector<1x128xf32>
    %c1_21 = arith.constant 1 : index
    %c0_22 = arith.constant 0 : index
    %40 = vector.load %arg9[%c1_21, %c0_22] : memref<7x256xf32, #tpu.memory_space<vmem>>, vector<1x128xf32>
    %cst_23 = arith.constant 9.99999974E-6 : f32
    %41 = vector.broadcast %cst_23 : f32 to vector<1x128xf32>
    %42 = arith.addf %38, %41 : vector<1x128xf32>
    %43 = math.rsqrt %42 : vector<1x128xf32>
    %44 = arith.mulf %39, %43 : vector<1x128xf32>
    %45 = vector.broadcast %44 : vector<1x128xf32> to vector<8x128xf32>
    %46 = arith.mulf %33, %45 : vector<8x128xf32>
    %47 = vector.broadcast %40 : vector<1x128xf32> to vector<8x128xf32>
    %48 = arith.addf %46, %47 : vector<8x128xf32>
    %cst_24 = arith.constant 0.000000e+00 : f32
    %49 = vector.broadcast %cst_24 : f32 to vector<8x128xf32>
    %50 = arith.maximumf %48, %49 : vector<8x128xf32>
    %c0_25 = arith.constant 0 : index
    %c0_26 = arith.constant 0 : index
    %51 = vector.load %arg3[%c0_25, %c0_26] : memref<128x128xf32, #tpu.memory_space<vmem>>, vector<128x128xf32>
    %cst_27 = arith.constant dense<0.000000e+00> : vector<8x128xf32>
    %52 = tpu.matmul %50, %51, %cst_27 {dimension_numbers = #tpu.dot_dimension_numbers<[1], [0], [0], [1], [0, 0, 1, 1], [], []>} : vector<8x128xf32>, vector<128x128xf32>, vector<8x128xf32> -> vector<8x128xf32>
    %cst_28 = arith.constant dense<0.000000e+00> : vector<128xf32>
    %53 = vector.multi_reduction <add>, %52, %cst_28 [0] : vector<8x128xf32> to vector<128xf32>
    %54 = vector.shape_cast %53 : vector<128xf32> to vector<1x128xf32>
    %cst_29 = arith.constant 1.250000e-01 : f32
    %55 = vector.broadcast %cst_29 : f32 to vector<1x128xf32>
    %56 = arith.mulf %54, %55 : vector<1x128xf32>
    %57 = vector.broadcast %56 : vector<1x128xf32> to vector<8x128xf32>
    %58 = arith.subf %52, %57 : vector<8x128xf32>
    %59 = arith.mulf %58, %58 : vector<8x128xf32>
    %cst_30 = arith.constant dense<0.000000e+00> : vector<128xf32>
    %60 = vector.multi_reduction <add>, %59, %cst_30 [0] : vector<8x128xf32> to vector<128xf32>
    %61 = vector.shape_cast %60 : vector<128xf32> to vector<1x128xf32>
    %cst_31 = arith.constant 1.250000e-01 : f32
    %62 = vector.broadcast %cst_31 : f32 to vector<1x128xf32>
    %63 = arith.mulf %61, %62 : vector<1x128xf32>
    %c2 = arith.constant 2 : index
    %c0_32 = arith.constant 0 : index
    %64 = vector.load %arg8[%c2, %c0_32] : memref<7x256xf32, #tpu.memory_space<vmem>>, vector<1x128xf32>
    %c2_33 = arith.constant 2 : index
    %c0_34 = arith.constant 0 : index
    %65 = vector.load %arg9[%c2_33, %c0_34] : memref<7x256xf32, #tpu.memory_space<vmem>>, vector<1x128xf32>
    %cst_35 = arith.constant 9.99999974E-6 : f32
    %66 = vector.broadcast %cst_35 : f32 to vector<1x128xf32>
    %67 = arith.addf %63, %66 : vector<1x128xf32>
    %68 = math.rsqrt %67 : vector<1x128xf32>
    %69 = arith.mulf %64, %68 : vector<1x128xf32>
    %70 = vector.broadcast %69 : vector<1x128xf32> to vector<8x128xf32>
    %71 = arith.mulf %58, %70 : vector<8x128xf32>
    %72 = vector.broadcast %65 : vector<1x128xf32> to vector<8x128xf32>
    %73 = arith.addf %71, %72 : vector<8x128xf32>
    %cst_36 = arith.constant 0.000000e+00 : f32
    %74 = vector.broadcast %cst_36 : f32 to vector<8x128xf32>
    %75 = arith.maximumf %73, %74 : vector<8x128xf32>
    %c0_37 = arith.constant 0 : index
    %c0_38 = arith.constant 0 : index
    %76 = vector.load %arg4[%c0_37, %c0_38] : memref<128x256xf32, #tpu.memory_space<vmem>>, vector<128x256xf32>
    %cst_39 = arith.constant dense<0.000000e+00> : vector<8x256xf32>
    %77 = tpu.matmul %75, %76, %cst_39 {dimension_numbers = #tpu.dot_dimension_numbers<[1], [0], [0], [1], [0, 0, 1, 1], [], []>} : vector<8x128xf32>, vector<128x256xf32>, vector<8x256xf32> -> vector<8x256xf32>
    %cst_40 = arith.constant dense<0.000000e+00> : vector<256xf32>
    %78 = vector.multi_reduction <add>, %77, %cst_40 [0] : vector<8x256xf32> to vector<256xf32>
    %79 = vector.shape_cast %78 : vector<256xf32> to vector<1x256xf32>
    %cst_41 = arith.constant 1.250000e-01 : f32
    %80 = vector.broadcast %cst_41 : f32 to vector<1x256xf32>
    %81 = arith.mulf %79, %80 : vector<1x256xf32>
    %82 = vector.broadcast %81 : vector<1x256xf32> to vector<8x256xf32>
    %83 = arith.subf %77, %82 : vector<8x256xf32>
    %84 = arith.mulf %83, %83 : vector<8x256xf32>
    %cst_42 = arith.constant dense<0.000000e+00> : vector<256xf32>
    %85 = vector.multi_reduction <add>, %84, %cst_42 [0] : vector<8x256xf32> to vector<256xf32>
    %86 = vector.shape_cast %85 : vector<256xf32> to vector<1x256xf32>
    %cst_43 = arith.constant 1.250000e-01 : f32
    %87 = vector.broadcast %cst_43 : f32 to vector<1x256xf32>
    %88 = arith.mulf %86, %87 : vector<1x256xf32>
    %c3 = arith.constant 3 : index
    %c0_44 = arith.constant 0 : index
    %89 = vector.load %arg8[%c3, %c0_44] : memref<7x256xf32, #tpu.memory_space<vmem>>, vector<1x256xf32>
    %c3_45 = arith.constant 3 : index
    %c0_46 = arith.constant 0 : index
    %90 = vector.load %arg9[%c3_45, %c0_46] : memref<7x256xf32, #tpu.memory_space<vmem>>, vector<1x256xf32>
    %cst_47 = arith.constant 9.99999974E-6 : f32
    %91 = vector.broadcast %cst_47 : f32 to vector<1x256xf32>
    %92 = arith.addf %88, %91 : vector<1x256xf32>
    %93 = math.rsqrt %92 : vector<1x256xf32>
    %94 = arith.mulf %89, %93 : vector<1x256xf32>
    %95 = vector.broadcast %94 : vector<1x256xf32> to vector<8x256xf32>
    %96 = arith.mulf %83, %95 : vector<8x256xf32>
    %97 = vector.broadcast %90 : vector<1x256xf32> to vector<8x256xf32>
    %98 = arith.addf %96, %97 : vector<8x256xf32>
    %cst_48 = arith.constant 0.000000e+00 : f32
    %99 = vector.broadcast %cst_48 : f32 to vector<8x256xf32>
    %100 = arith.maximumf %98, %99 : vector<8x256xf32>
    %c0_49 = arith.constant 0 : index
    %c0_50 = arith.constant 0 : index
    %101 = vector.load %arg5[%c0_49, %c0_50] : memref<256x128xf32, #tpu.memory_space<vmem>>, vector<256x128xf32>
    %cst_51 = arith.constant dense<0.000000e+00> : vector<8x128xf32>
    %102 = tpu.matmul %100, %101, %cst_51 {dimension_numbers = #tpu.dot_dimension_numbers<[1], [0], [0], [1], [0, 0, 1, 1], [], []>} : vector<8x256xf32>, vector<256x128xf32>, vector<8x128xf32> -> vector<8x128xf32>
    %cst_52 = arith.constant dense<0.000000e+00> : vector<128xf32>
    %103 = vector.multi_reduction <add>, %102, %cst_52 [0] : vector<8x128xf32> to vector<128xf32>
    %104 = vector.shape_cast %103 : vector<128xf32> to vector<1x128xf32>
    %cst_53 = arith.constant 1.250000e-01 : f32
    %105 = vector.broadcast %cst_53 : f32 to vector<1x128xf32>
    %106 = arith.mulf %104, %105 : vector<1x128xf32>
    %107 = vector.broadcast %106 : vector<1x128xf32> to vector<8x128xf32>
    %108 = arith.subf %102, %107 : vector<8x128xf32>
    %109 = arith.mulf %108, %108 : vector<8x128xf32>
    %cst_54 = arith.constant dense<0.000000e+00> : vector<128xf32>
    %110 = vector.multi_reduction <add>, %109, %cst_54 [0] : vector<8x128xf32> to vector<128xf32>
    %111 = vector.shape_cast %110 : vector<128xf32> to vector<1x128xf32>
    %cst_55 = arith.constant 1.250000e-01 : f32
    %112 = vector.broadcast %cst_55 : f32 to vector<1x128xf32>
    %113 = arith.mulf %111, %112 : vector<1x128xf32>
    %c4 = arith.constant 4 : index
    %c0_56 = arith.constant 0 : index
    %114 = vector.load %arg8[%c4, %c0_56] : memref<7x256xf32, #tpu.memory_space<vmem>>, vector<1x128xf32>
    %c4_57 = arith.constant 4 : index
    %c0_58 = arith.constant 0 : index
    %115 = vector.load %arg9[%c4_57, %c0_58] : memref<7x256xf32, #tpu.memory_space<vmem>>, vector<1x128xf32>
    %cst_59 = arith.constant 9.99999974E-6 : f32
    %116 = vector.broadcast %cst_59 : f32 to vector<1x128xf32>
    %117 = arith.addf %113, %116 : vector<1x128xf32>
    %118 = math.rsqrt %117 : vector<1x128xf32>
    %119 = arith.mulf %114, %118 : vector<1x128xf32>
    %120 = vector.broadcast %119 : vector<1x128xf32> to vector<8x128xf32>
    %121 = arith.mulf %108, %120 : vector<8x128xf32>
    %122 = vector.broadcast %115 : vector<1x128xf32> to vector<8x128xf32>
    %123 = arith.addf %121, %122 : vector<8x128xf32>
    %cst_60 = arith.constant 0.000000e+00 : f32
    %124 = vector.broadcast %cst_60 : f32 to vector<8x128xf32>
    %125 = arith.maximumf %123, %124 : vector<8x128xf32>
    %c0_61 = arith.constant 0 : index
    %c0_62 = arith.constant 0 : index
    %126 = vector.load %arg6[%c0_61, %c0_62] : memref<128x128xf32, #tpu.memory_space<vmem>>, vector<128x128xf32>
    %cst_63 = arith.constant dense<0.000000e+00> : vector<8x128xf32>
    %127 = tpu.matmul %125, %126, %cst_63 {dimension_numbers = #tpu.dot_dimension_numbers<[1], [0], [0], [1], [0, 0, 1, 1], [], []>} : vector<8x128xf32>, vector<128x128xf32>, vector<8x128xf32> -> vector<8x128xf32>
    %cst_64 = arith.constant dense<0.000000e+00> : vector<128xf32>
    %128 = vector.multi_reduction <add>, %127, %cst_64 [0] : vector<8x128xf32> to vector<128xf32>
    %129 = vector.shape_cast %128 : vector<128xf32> to vector<1x128xf32>
    %cst_65 = arith.constant 1.250000e-01 : f32
    %130 = vector.broadcast %cst_65 : f32 to vector<1x128xf32>
    %131 = arith.mulf %129, %130 : vector<1x128xf32>
    %132 = vector.broadcast %131 : vector<1x128xf32> to vector<8x128xf32>
    %133 = arith.subf %127, %132 : vector<8x128xf32>
    %134 = arith.mulf %133, %133 : vector<8x128xf32>
    %cst_66 = arith.constant dense<0.000000e+00> : vector<128xf32>
    %135 = vector.multi_reduction <add>, %134, %cst_66 [0] : vector<8x128xf32> to vector<128xf32>
    %136 = vector.shape_cast %135 : vector<128xf32> to vector<1x128xf32>
    %cst_67 = arith.constant 1.250000e-01 : f32
    %137 = vector.broadcast %cst_67 : f32 to vector<1x128xf32>
    %138 = arith.mulf %136, %137 : vector<1x128xf32>
    %c5 = arith.constant 5 : index
    %c0_68 = arith.constant 0 : index
    %139 = vector.load %arg8[%c5, %c0_68] : memref<7x256xf32, #tpu.memory_space<vmem>>, vector<1x128xf32>
    %c5_69 = arith.constant 5 : index
    %c0_70 = arith.constant 0 : index
    %140 = vector.load %arg9[%c5_69, %c0_70] : memref<7x256xf32, #tpu.memory_space<vmem>>, vector<1x128xf32>
    %cst_71 = arith.constant 9.99999974E-6 : f32
    %141 = vector.broadcast %cst_71 : f32 to vector<1x128xf32>
    %142 = arith.addf %138, %141 : vector<1x128xf32>
    %143 = math.rsqrt %142 : vector<1x128xf32>
    %144 = arith.mulf %139, %143 : vector<1x128xf32>
    %145 = vector.broadcast %144 : vector<1x128xf32> to vector<8x128xf32>
    %146 = arith.mulf %133, %145 : vector<8x128xf32>
    %147 = vector.broadcast %140 : vector<1x128xf32> to vector<8x128xf32>
    %148 = arith.addf %146, %147 : vector<8x128xf32>
    %cst_72 = arith.constant 0.000000e+00 : f32
    %149 = vector.broadcast %cst_72 : f32 to vector<8x128xf32>
    %150 = arith.maximumf %148, %149 : vector<8x128xf32>
    %c0_73 = arith.constant 0 : index
    %c0_74 = arith.constant 0 : index
    %151 = vector.load %arg7[%c0_73, %c0_74] : memref<128x128xf32, #tpu.memory_space<vmem>>, vector<128x128xf32>
    %cst_75 = arith.constant dense<0.000000e+00> : vector<8x128xf32>
    %152 = tpu.matmul %150, %151, %cst_75 {dimension_numbers = #tpu.dot_dimension_numbers<[1], [0], [0], [1], [0, 0, 1, 1], [], []>} : vector<8x128xf32>, vector<128x128xf32>, vector<8x128xf32> -> vector<8x128xf32>
    %cst_76 = arith.constant dense<0.000000e+00> : vector<128xf32>
    %153 = vector.multi_reduction <add>, %152, %cst_76 [0] : vector<8x128xf32> to vector<128xf32>
    %154 = vector.shape_cast %153 : vector<128xf32> to vector<1x128xf32>
    %cst_77 = arith.constant 1.250000e-01 : f32
    %155 = vector.broadcast %cst_77 : f32 to vector<1x128xf32>
    %156 = arith.mulf %154, %155 : vector<1x128xf32>
    %157 = vector.broadcast %156 : vector<1x128xf32> to vector<8x128xf32>
    %158 = arith.subf %152, %157 : vector<8x128xf32>
    %159 = arith.mulf %158, %158 : vector<8x128xf32>
    %cst_78 = arith.constant dense<0.000000e+00> : vector<128xf32>
    %160 = vector.multi_reduction <add>, %159, %cst_78 [0] : vector<8x128xf32> to vector<128xf32>
    %161 = vector.shape_cast %160 : vector<128xf32> to vector<1x128xf32>
    %cst_79 = arith.constant 1.250000e-01 : f32
    %162 = vector.broadcast %cst_79 : f32 to vector<1x128xf32>
    %163 = arith.mulf %161, %162 : vector<1x128xf32>
    %c6 = arith.constant 6 : index
    %c0_80 = arith.constant 0 : index
    %164 = vector.load %arg8[%c6, %c0_80] : memref<7x256xf32, #tpu.memory_space<vmem>>, vector<1x128xf32>
    %c6_81 = arith.constant 6 : index
    %c0_82 = arith.constant 0 : index
    %165 = vector.load %arg9[%c6_81, %c0_82] : memref<7x256xf32, #tpu.memory_space<vmem>>, vector<1x128xf32>
    %cst_83 = arith.constant 9.99999974E-6 : f32
    %166 = vector.broadcast %cst_83 : f32 to vector<1x128xf32>
    %167 = arith.addf %163, %166 : vector<1x128xf32>
    %168 = math.rsqrt %167 : vector<1x128xf32>
    %169 = arith.mulf %164, %168 : vector<1x128xf32>
    %170 = vector.broadcast %169 : vector<1x128xf32> to vector<8x128xf32>
    %171 = arith.mulf %158, %170 : vector<8x128xf32>
    %172 = vector.broadcast %165 : vector<1x128xf32> to vector<8x128xf32>
    %173 = arith.addf %171, %172 : vector<8x128xf32>
    %cst_84 = arith.constant 0.000000e+00 : f32
    %174 = vector.broadcast %cst_84 : f32 to vector<8x128xf32>
    %175 = arith.maximumf %173, %174 : vector<8x128xf32>
    %176 = tpu.iota {dimensions = array<i32: 1>} : vector<8x128xi32>
    %c30_i32 = arith.constant 30 : i32
    %177 = vector.broadcast %c30_i32 : i32 to vector<8x128xi32>
    %178 = arith.cmpi slt, %176, %177 : vector<8x128xi32>
    %cst_85 = arith.constant -1.000000e+30 : f32
    %179 = vector.broadcast %cst_85 : f32 to vector<8x128xf32>
    %180 = arith.select %178, %175, %179 : vector<8x128xi1>, vector<8x128xf32>
    %cst_86 = arith.constant dense<0xFF800000> : vector<8xf32>
    %181 = vector.multi_reduction <maximumf>, %180, %cst_86 [1] : vector<8x128xf32> to vector<8xf32>
    %182 = vector.shape_cast %181 : vector<8xf32> to vector<8x1xf32>
    %183 = vector.broadcast %182 : vector<8x1xf32> to vector<8x128xf32>
    %184 = arith.subf %180, %183 : vector<8x128xf32>
    %185 = math.exp %184 : vector<8x128xf32>
    %cst_87 = arith.constant dense<0.000000e+00> : vector<8xf32>
    %186 = vector.multi_reduction <add>, %185, %cst_87 [1] : vector<8x128xf32> to vector<8xf32>
    %187 = vector.shape_cast %186 : vector<8xf32> to vector<8x1xf32>
    %188 = math.log %187 : vector<8x1xf32>
    %189 = vector.broadcast %188 : vector<8x1xf32> to vector<8x128xf32>
    %190 = arith.subf %184, %189 : vector<8x128xf32>
    %c0_88 = arith.constant 0 : index
    %c0_89 = arith.constant 0 : index
    %191 = vector.load %arg10[%c0_88, %c0_89] : memref<8x128xf32, #tpu.memory_space<vmem>>, vector<8x128xf32>
    tpu.vector_store %arg10[%c0_88, %c0_89], %190 {strides = array<i32>} : memref<8x128xf32, #tpu.memory_space<vmem>>, vector<8x128xf32>,
    return
  }
}

</mosaic_0001>

<bundles_post_ra>
// kernel: tpu_custom_call.1
= control target key start
LH: loop header
LB: loop body
LE: loop exit
PB: predicated region body
PF: predicated region fallthrough
CT: control target
= control target key end

     0   :  { %15 = vsyncpa [#allocation3], 0  ;;  %s1271_s0 = inlined_call_operand.hbm [shape: f32[8,128], index: 0, kind: input, shape index: {}]   ;;  %s1272_s1 = inlined_call_operand.hbm [shape: f32[128,128], index: 1, kind: input, shape index: {}]   ;;  %s1273_s2 = inlined_call_operand.hbm [shape: f32[128,128], index: 2, kind: input, shape index: {}]   ;;  %s1274_s3 = inlined_call_operand.hbm [shape: f32[128,128], index: 3, kind: input, shape index: {}]   ;;  %s1275_s4 = inlined_call_operand.hbm [shape: f32[128,256], index: 4, kind: input, shape index: {}]   ;;  %s1276_s5 = inlined_call_operand.hbm [shape: f32[256,128], index: 5, kind: input, shape index: {}]   ;;  %s1277_s6 = inlined_call_operand.hbm [shape: f32[128,128], index: 6, kind: input, shape index: {}]   ;;  %s1278_s7 = inlined_call_operand.hbm [shape: f32[128,128], index: 7, kind: input, shape index: {}]   ;;  %s1279_s8 = inlined_call_operand.hbm [shape: f32[7,256], index: 8, kind: input, shape index: {}]   ;;  %s1280_s9 = inlined_call_operand.hbm [shape: f32[7,256], index: 9, kind: input, shape index: {}]   ;;  %s1281_s10 = inlined_call_operand.hbm [shape: f32[8,128], index: 10, kind: output, shape index: {}]  }
   0x1   :  { %16 = vsyncpa [#allocation6], 0 }
   0x2   :  { %17 = vsyncpa [#allocation9], 0 }
   0x3   :  { %18 = vsyncpa [#allocation12], 0 }
   0x4   :  { %19 = vsyncpa [#allocation15], 0 }
   0x5   :  { %20 = vsyncpa [#allocation18], 0  ;;  %s37_s15 = sshll.u32 %s1272_s1, 4  ;;  %s38_s15 = int_to_ptr.hbm [resolvable:$true] %s37_s15 }
   0x6   :  { %21 = vsyncpa [#allocation4], 0  ;;  %s1140_s16 = smov [#allocation5]   ;;  %s63_s20 = sshll.u32 %s1274_s3, 4  ;;  %s64_s20 = int_to_ptr.hbm [resolvable:$true] %s63_s20 }
   0x7   :  { %s39_s17 = sshll.u32 %s1140_s16, 4  ;;  %s1141_s21 = smov 128   ;;  %s40_s17 = int_to_ptr.vmem [resolvable:$true] %s39_s17 }
   0x8   :  { %s1142_s22 = smov 8   ;;  %s1143_s23 = smov [#allocation8]  }
   0x9   :  { %45 = dma.hbm_to_vmem [thread:$0]  %s38_s15, 2048, %s40_s17, [#allocation6], %s1141_s21, %s1141_s21, %s1142_s22  }
   0xa   :  { %s65_s24 = sshll.u32 %s1143_s23, 4  ;;  %s89_s26 = sshll.u32 %s1276_s5, 4  ;;  %s66_s24 = int_to_ptr.vmem [resolvable:$true] %s65_s24  ;;  %s90_s26 = int_to_ptr.hbm [resolvable:$true] %s89_s26 }
   0xb   :  { %71 = dma.hbm_to_vmem [thread:$0]  %s64_s20, 2048, %s66_s24, [#allocation9], %s1141_s21, %s1141_s21, %s1142_s22  }
   0xc   :  { %s115_s28 = sshll.u32 %s1278_s7, 4  ;;  %s1144_s29 = smov [#allocation11]   ;;  %s116_s28 = int_to_ptr.hbm [resolvable:$true] %s115_s28 }
   0xd   :  { %s91_s30 = sshll.u32 %s1144_s29, 4  ;;  %s1145_s11 = smov [#allocation14]   ;;  %s92_s30 = int_to_ptr.vmem [resolvable:$true] %s91_s30 }
   0xe   :  { %97 = dma.hbm_to_vmem [thread:$0]  %s90_s26, 4096, %s92_s30, [#allocation12], %s1141_s21, %s1141_s21, %s1142_s22  }
   0xf   :  { %s117_s5 = sshll.u32 %s1145_s11, 4  ;;  %s27_s14 = sshll.u32 %s1271_s0, 4  ;;  %s118_s5 = int_to_ptr.vmem [resolvable:$true] %s117_s5  ;;  %s28_s14 = int_to_ptr.hbm [resolvable:$true] %s27_s14 }
  0x10   :  { %123 = dma.hbm_to_vmem [thread:$0]  %s116_s28, 2048, %s118_s5, [#allocation15], %s1141_s21, %s1141_s21, %s1142_s22  }
  0x11   :  { %s50_s16 = sshll.u32 %s1273_s2, 4  ;;  %s1146_s17 = smov [#allocation2]   ;;  %s51_s16 = int_to_ptr.hbm [resolvable:$true] %s50_s16 }
  0x12   :  { %s29_s18 = sshll.u32 %s1146_s17, 4  ;;  %s1147_s19 = smov [#allocation7]   ;;  %s30_s18 = int_to_ptr.vmem [resolvable:$true] %s29_s18 }
  0x13   :  { %32 = dma.hbm_to_vmem [thread:$0]  %s28_s14, 128, %s30_s18, [#allocation3]  }
  0x14   :  { %s52_s20 = sshll.u32 %s1147_s19, 4  ;;  %s76_s0 = sshll.u32 %s1275_s4, 4  ;;  %s53_s20 = int_to_ptr.vmem [resolvable:$true] %s52_s20  ;;  %s77_s0 = int_to_ptr.hbm [resolvable:$true] %s76_s0 }
  0x15   :  { %58 = dma.hbm_to_vmem [thread:$0]  %s51_s16, 2048, %s53_s20, [#allocation6], %s1141_s21, %s1141_s21, %s1142_s22  }
  0x16   :  { %s1148_s25 = smov [#allocation10]   ;;  %s102_s3 = sshll.u32 %s1277_s6, 4  ;;  %s103_s3 = int_to_ptr.hbm [resolvable:$true] %s102_s3 }
  0x17   :  { %s78_s1 = sshll.u32 %s1148_s25, 4  ;;  %s1149_s27 = smov 256   ;;  %s79_s1 = int_to_ptr.vmem [resolvable:$true] %s78_s1 }
  0x18   :  { %s1150_s28 = smov 16   ;;  %s1151_s29 = smov [#allocation13]  }
  0x19   :  { %84 = dma.hbm_to_vmem [thread:$0]  %s77_s0, 4096, %s79_s1, [#allocation9], %s1149_s27, %s1149_s27, %s1150_s28  }
  0x1a   :  { %s104_s30 = sshll.u32 %s1151_s29, 4  ;;  %s129_s5 = sshll.u32 %s1279_s8, 4  ;;  %s105_s30 = int_to_ptr.vmem [resolvable:$true] %s104_s30  ;;  %s130_s5 = int_to_ptr.hbm [resolvable:$true] %s129_s5 }
  0x1b   :  { %110 = dma.hbm_to_vmem [thread:$0]  %s103_s3, 2048, %s105_s30, [#allocation12], %s1141_s21, %s1141_s21, %s1142_s22  }
  0x1c   :  { %s140_s6 = sshll.u32 %s1280_s9, 4  ;;  %s1152_s14 = smov [#allocation16]   ;;  %s141_s6 = int_to_ptr.hbm [resolvable:$true] %s140_s6 }
  0x1d   :  { %s131_s7 = sshll.u32 %s1152_s14, 4  ;;  %s1153_s15 = smov [#allocation17]   ;;  %s132_s7 = int_to_ptr.vmem [resolvable:$true] %s131_s7 }
  0x1e   :  { %134 = dma.hbm_to_vmem [thread:$0]  %s130_s5, 256, %s132_s7, [#allocation15]  }
  0x1f   :  { %s142_s16 = sshll.u32 %s1153_s15, 4  ;;  %s143_s16 = int_to_ptr.vmem [resolvable:$true] %s142_s16 }
  0x20   :  { %145 = dma.hbm_to_vmem [thread:$0]  %s141_s6, 256, %s143_s16, [#allocation18]  }
  0x21   :  { %1126 = dma.done.wait [#allocation3], 128  }
  0x22   :  { %1127 = vsyncadd [#allocation3], 4294967168 }
  0x23   :  { %1128 = dma.done.wait [#allocation6], 4096  }
  0x24   :  { %1129 = vsyncadd [#allocation6], 4294963200 }
  0x25   :  { %1130 = dma.done.wait [#allocation9], 6144  }
  0x26   :  { %1131 = vsyncadd [#allocation9], 4294961152 }
  0x27   :  { %1132 = dma.done.wait [#allocation12], 6144  }
  0x28   :  { %1133 = vsyncadd [#allocation12], 4294961152 }
  0x29   :  { %1134 = dma.done.wait [#allocation15], 2304  }
  0x2a   :  { %1135 = vsyncadd [#allocation15], 4294964992 }
  0x2b   :  { %1136 = dma.done.wait [#allocation18], 256  }
  0x2c   :  { %1137 = vsyncadd [#allocation18], 4294967040  ;;  %v202_v0 = vld [vmem:[#allocation5 + $0x78] sm:$0xff]  ;;  %v201_v1 = vld [vmem:[#allocation5 + $0x70] sm:$0xff]  ;;  %vm527_vm14 = vcmask 1040384   ;;  %s1154_s8 = smov [#allocation19]  }
  0x2d   :  { %203 = vmatpush.msra.mxu0 %v202_v0  ;;  %v200_v2 = vld [vmem:[#allocation5 + $0x68] sm:$0xff]  ;;  %v199_v3 = vld [vmem:[#allocation5 + $0x60] sm:$0xff]  ;;  %v198_v4 = vld [vmem:[#allocation5 + $0x58] sm:$0xff]  ;;  %s810_s9 = sshll.u32 %s1154_s8, 4  ;;  %s812_s17 = sshll.u32 %s1281_s10, 4  ;;  %s811_s9 = int_to_ptr.vmem [resolvable:$true] %s810_s9  ;;  %s813_s17 = int_to_ptr.hbm [resolvable:$true] %s812_s17 }
  0x2e   :  { %v197_v5 = vld [vmem:[#allocation5 + $0x50] sm:$0xff]  ;;  %v196_v6 = vld [vmem:[#allocation5 + $0x48] sm:$0xff]  ;;  %v195_v7 = vld [vmem:[#allocation5 + $0x40] sm:$0xff] }
  0x2f   :  { %204 = vmatpush.msra.mxu0 %v201_v1  ;;  %v194_v8 = vld [vmem:[#allocation5 + $0x38] sm:$0xff]  ;;  %v193_v9 = vld [vmem:[#allocation5 + $0x30] sm:$0xff]  ;;  %v192_v10 = vld [vmem:[#allocation5 + $0x28] sm:$0xff] }
  0x30   :  { %v191_v11 = vld [vmem:[#allocation5 + $0x20] sm:$0xff]  ;;  %v190_v12 = vld [vmem:[#allocation5 + $0x18] sm:$0xff]  ;;  %v189_v13 = vld [vmem:[#allocation5 + $0x10] sm:$0xff] }
  0x31   :  { %205 = vmatpush.msra.mxu0 %v200_v2  ;;  %v188_v14 = vld [vmem:[#allocation5 + $0x8] sm:$0xff]  ;;  %v187_v15 = vld [vmem:[#allocation5] sm:$0xff]  ;;  %v186_v16 = vld [vmem:[#allocation2] sm:$0xff] }
  0x32   :  { %v271_v17 = vld [vmem:[#allocation7 + $0x78] sm:$0xff]  ;;  %v270_v18 = vld [vmem:[#allocation7 + $0x70] sm:$0xff]  ;;  %v269_v21 = vld [vmem:[#allocation7 + $0x68] sm:$0xff] }
  0x33   :  { %206 = vmatpush.msra.mxu0 %v199_v3  ;;  %272 = vmatpush.msra.mxu1 %v271_v17  ;;  %v268_v23 = vld [vmem:[#allocation7 + $0x60] sm:$0xff]  ;;  %v267_v24 = vld [vmem:[#allocation7 + $0x58] sm:$0xff]  ;;  %v266_v26 = vld [vmem:[#allocation7 + $0x50] sm:$0xff] }
  0x34   :  { %v265_v28 = vld [vmem:[#allocation7 + $0x48] sm:$0xff]  ;;  %v264_v30 = vld [vmem:[#allocation7 + $0x40] sm:$0xff]  ;;  %v263_v32 = vld [vmem:[#allocation7 + $0x38] sm:$0xff] }
  0x35   :  { %207 = vmatpush.msra.mxu0 %v198_v4  ;;  %273 = vmatpush.msra.mxu1 %v270_v18  ;;  %v262_v34 = vld [vmem:[#allocation7 + $0x30] sm:$0xff]  ;;  %v261_v36 = vld [vmem:[#allocation7 + $0x28] sm:$0xff]  ;;  %v260_v38 = vld [vmem:[#allocation7 + $0x20] sm:$0xff] }
  0x36   :  { %v259_v40 = vld [vmem:[#allocation7 + $0x18] sm:$0xff]  ;;  %v258_v42 = vld [vmem:[#allocation7 + $0x10] sm:$0xff]  ;;  %v257_v44 = vld [vmem:[#allocation7 + $0x8] sm:$0xff] }
  0x37   :  { %208 = vmatpush.msra.mxu0 %v197_v5  ;;  %274 = vmatpush.msra.mxu1 %v269_v21  ;;  %v256_v46 = vld [vmem:[#allocation7] sm:$0xff]  ;;  %v240_v60 = vld [vmem:[#allocation17] ss:$0 sm:$0xff]  ;;  %v340_v0 = vld [vmem:[#allocation8 + $0x78] sm:$0xff] }
  0x38   :  { %v239_v56 = vld [vmem:[#allocation16] ss:$0 sm:$0xff]  ;;  %341 = vmatpush.msra.mxu2 %v340_v0  ;;  %v339_v1 = vld [vmem:[#allocation8 + $0x70] sm:$0xff]  ;;  %v338_v4 = vld [vmem:[#allocation8 + $0x68] sm:$0xff] }
  0x39   :  { %209 = vmatpush.msra.mxu0 %v196_v6  ;;  %275 = vmatpush.msra.mxu1 %v268_v23  ;;  %v337_v6 = vld [vmem:[#allocation8 + $0x60] sm:$0xff]  ;;  %v331_v17 = vld [vmem:[#allocation8 + $0x30] sm:$0xff]  ;;  %v328_v23 = vld [vmem:[#allocation8 + $0x18] sm:$0xff] }
  0x3a   :  { %342 = vmatpush.msra.mxu2 %v339_v1  ;;  %v329_v21 = vld [vmem:[#allocation8 + $0x20] sm:$0xff]  ;;  %v412_v0 = vld [vmem:[#allocation10 + $0x90] sm:$0xff]  ;;  %v413_v1 = vld [vmem:[#allocation10 + $0x98] sm:$0xff] }
  0x3b   :  { %210 = vmatpush.msra.mxu0 %v195_v7  ;;  %276 = vmatpush.msra.mxu1 %v267_v24  ;;  %v336_v7 = vld [vmem:[#allocation8 + $0x58] sm:$0xff] }
  0x3c   :  { %343 = vmatpush.msra.mxu2 %v338_v4  ;;  %v411_v4 = vld [vmem:[#allocation10 + $0x88] sm:$0xff] }
  0x3d   :  { %211 = vmatpush.msra.mxu0 %v194_v8  ;;  %277 = vmatpush.msra.mxu1 %v266_v26 }
  0x3e   :  { %344 = vmatpush.msra.mxu2 %v337_v6  ;;  %v408_v6 = vld [vmem:[#allocation10 + $0x70] sm:$0xff] }
  0x3f   :  { %212 = vmatpush.msra.mxu0 %v193_v9  ;;  %278 = vmatpush.msra.mxu1 %v265_v28  ;;  %v335_v9 = vld [vmem:[#allocation8 + $0x50] sm:$0xff] }
  0x40   :  { %345 = vmatpush.msra.mxu2 %v336_v7  ;;  %v409_v7 = vld [vmem:[#allocation10 + $0x78] sm:$0xff] }
  0x41   :  { %213 = vmatpush.msra.mxu0 %v192_v10  ;;  %279 = vmatpush.msra.mxu1 %v264_v30 }
  0x42   :  { %346 = vmatpush.msra.mxu2 %v335_v9  ;;  %v406_v9 = vld [vmem:[#allocation10 + $0x60] sm:$0xff] }
  0x43   :  { %214 = vmatpush.msra.mxu0 %v191_v11  ;;  %280 = vmatpush.msra.mxu1 %v263_v32  ;;  %v334_v11 = vld [vmem:[#allocation8 + $0x48] sm:$0xff] }
  0x44   :  { %347 = vmatpush.msra.mxu2 %v334_v11 }
  0x45   :  { %215 = vmatpush.msra.mxu0 %v190_v12  ;;  %281 = vmatpush.msra.mxu1 %v262_v34 }
  0x47   :  { %216 = vmatpush.msra.mxu0 %v189_v13  ;;  %282 = vmatpush.msra.mxu1 %v261_v36  ;;  %v333_v13 = vld [vmem:[#allocation8 + $0x40] sm:$0xff] }
  0x48   :  { %348 = vmatpush.msra.mxu2 %v333_v13  ;;  %v405_v13 = vld [vmem:[#allocation10 + $0x58] sm:$0xff] }
  0x49   :  { %217 = vmatpush.msra.mxu0 %v188_v14  ;;  %283 = vmatpush.msra.mxu1 %v260_v38 }
  0x4b   :  { %218 = vmatpush.msra.mxu0 %v187_v15  ;;  %284 = vmatpush.msra.mxu1 %v259_v40  ;;  %v332_v15 = vld [vmem:[#allocation8 + $0x38] sm:$0xff] }
  0x4c   :  { %219 = vmatmul.f32.vlgmr.msra.gmra.mxu0 %v186_v16  ;;  %349 = vmatpush.msra.mxu2 %v332_v15  ;;  %v402_v15 = vld [vmem:[#allocation10 + $0x40] sm:$0xff] }
  0x4d   :  { %285 = vmatpush.msra.mxu1 %v258_v42 }
  0x4e   :  { %350 = vmatpush.msra.mxu2 %v331_v17 }
  0x4f   :  { %286 = vmatpush.msra.mxu1 %v257_v44 }
  0x51   :  { %287 = vmatpush.msra.mxu1 %v256_v46 }
  0xc9   :  { %v220_v19 = vpop.f32.mrf.mxu0 }
  0xca   :  { %v223_v20 = vrot.slane %v220_v19, 4 }
  0xcc   :  { %v224_v22 = vadd.f32 %v223_v20, %v220_v19 }
  0xce   :  { %v225_v25 = vrot.slane %v224_v22, 2 }
  0xd0   :  { %v226_v27 = vadd.f32 %v225_v25, %v224_v22  ;;  %v327_v25 = vld [vmem:[#allocation8 + $0x10] sm:$0xff] }
  0xd2   :  { %v227_v29 = vrot.slane %v226_v27, 1 }
  0xd4   :  { %v228_v31 = vadd.f32 %v227_v29, %v226_v27  ;;  %v326_v27 = vld [vmem:[#allocation8 + $0x8] sm:$0xff]  ;;  %v325_v29 = vld [vmem:[#allocation8] sm:$0xff] }
  0xd6   :  { %v229_v33 = vmul.f32 0.125, %v228_v31 }
  0xd8   :  { %v230_v35 = vsub.f32 %v220_v19, %v229_v33  ;;  %v330_v19 = vld [vmem:[#allocation8 + $0x28] sm:$0xff] }
  0xd9   :  { %351 = vmatpush.msra.mxu2 %v330_v19  ;;  %v401_v19 = vld [vmem:[#allocation10 + $0x38] sm:$0xff] }
  0xda   :  { %v231_v37 = vmul.f32 %v230_v35, %v230_v35 }
  0xdb   :  { %352 = vmatpush.msra.mxu2 %v329_v21  ;;  %v398_v21 = vld [vmem:[#allocation10 + $0x20] sm:$0xff] }
  0xdc   :  { %v232_v39 = vrot.slane %v231_v37, 4 }
  0xdd   :  { %353 = vmatpush.msra.mxu2 %v328_v23 }
  0xde   :  { %v233_v41 = vadd.f32 %v232_v39, %v231_v37  ;;  %v308_v39 = vld [vmem:[#allocation16 + $0x1] ss:$0 sm:$0xff] }
  0xdf   :  { %354 = vmatpush.msra.mxu2 %v327_v25  ;;  %v397_v25 = vld [vmem:[#allocation10 + $0x18] sm:$0xff] }
  0xe0   :  { %v234_v43 = vrot.slane %v233_v41, 2 }
  0xe1   :  { %355 = vmatpush.msra.mxu2 %v326_v27  ;;  %v394_v27 = vld [vmem:[#allocation10] sm:$0xff] }
  0xe2   :  { %v235_v45 = vadd.f32 %v234_v43, %v233_v41  ;;  %v309_v43 = vld [vmem:[#allocation17 + $0x1] ss:$0 sm:$0xff] }
  0xe3   :  { %356 = vmatpush.msra.mxu2 %v325_v29 }
  0xe4   :  { %v236_v47 = vrot.slane %v235_v45, 1 }
  0xe6   :  { %v237_v48 = vadd.f32 %v236_v47, %v235_v45  ;;  %v424_v47 = vld [vmem:[#allocation10 + $0xf0] sm:$0xff] }
  0xe7   :  { %426 = vmatpush.msra.mxu3 %v424_v47 }
  0xe8   :  { %v238_v49 = vmul.f32 0.125, %v237_v48  ;;  %v425_v48 = vld [vmem:[#allocation10 + $0xf8] sm:$0xff] }
  0xe9   :  { %446 = vmatpush.msrb.mxu0 %v425_v48 }
  0xea   :  { %v241_v50 = vadd.f32 1e-05, %v238_v49  ;;  %v422_v49 = vld [vmem:[#allocation10 + $0xe0] sm:$0xff] }
  0xeb   :  { %427 = vmatpush.msra.mxu3 %v422_v49 }
  0xec   :  { %842 = vrsqrt.f32 %v241_v50  ;;  %vm248_vm1 = vweird.f32 %v241_v50 }
  0xf2   :  { %v843_v51 = vpop.eup %842 }
  0xf3   :  { %v243_v52 = vmul.f32 %v843_v51, %v241_v50  ;;  %vm249_vm0 = vweird.f32 %v843_v51  ;;  %v423_v50 = vld [vmem:[#allocation10 + $0xe8] sm:$0xff] }
  0xf4   :  { %vm250_vm2 = vmor %vm248_vm1, %vm249_vm0  ;;  %447 = vmatpush.msrb.mxu0 %v423_v50 }
  0xf5   :  { %v244_v53 = vmul.f32 %v843_v51, %v243_v52 }
  0xf7   :  { %v245_v54 = vmul.f32 0.5, %v244_v53  ;;  %v420_v53 = vld [vmem:[#allocation10 + $0xd0] sm:$0xff] }
  0xf8   :  { %428 = vmatpush.msra.mxu3 %v420_v53 }
  0xf9   :  { %v246_v55 = vsub.f32 1.5, %v245_v54  ;;  %v421_v54 = vld [vmem:[#allocation10 + $0xd8] sm:$0xff] }
  0xfa   :  { %448 = vmatpush.msrb.mxu0 %v421_v54 }
  0xfb   :  { %v247_v57 = vmul.f32 %v843_v51, %v246_v55 }
  0xfd   :  { %v251_v58 = vsel %vm250_vm2, %v843_v51, %v247_v57  ;;  %v419_v57 = vld [vmem:[#allocation10 + $0xc8] sm:$0xff] }
  0xfe   :  { %v252_v59 = vmul.f32 %v251_v58, %v239_v56  ;;  %v418_v56 = vld [vmem:[#allocation10 + $0xc0] sm:$0xff]  ;;  %v416_v58 = vld [vmem:[#allocation10 + $0xb0] sm:$0xff]  ;;  %449 = vmatpush.msrb.mxu0 %v419_v57 }
  0xff   :  { %429 = vmatpush.msra.mxu3 %v418_v56  ;;  %v577_v56 = vld [vmem:[#allocation11 + $0xf0] sm:$0xff] }
 0x100   :  { %v253_v61 = vmul.f32 %v252_v59, %v230_v35  ;;  %v417_v59 = vld [vmem:[#allocation10 + $0xb8] sm:$0xff] }
 0x101   :  { %430 = vmatpush.msra.mxu3 %v416_v58  ;;  %450 = vmatpush.msrb.mxu0 %v417_v59  ;;  %v560_v59 = vld [vmem:[#allocation11 + $0x68] sm:$0xff] }
 0x102   :  { %v254_v62 = vadd.f32 %v253_v61, %v240_v60  ;;  %v414_v61 = vld [vmem:[#allocation10 + $0xa0] sm:$0xff] }
 0x103   :  { %431 = vmatpush.msra.mxu3 %v414_v61 }
 0x104   :  { %v255_v63 = vmax.f32 %v254_v62, 0.0  ;;  %v415_v62 = vld [vmem:[#allocation10 + $0xa8] sm:$0xff] }
 0x105   :  { %451 = vmatpush.msrb.mxu0 %v415_v62  ;;  %432 = vmatpush.msra.mxu3 %v412_v0  ;;  %v575_v0 = vld [vmem:[#allocation11 + $0xe0] sm:$0xff] }
 0x106   :  { %288 = vmatmul.f32.vlgmr.msra.gmra.mxu1 %v255_v63 }
 0x107   :  { %452 = vmatpush.msrb.mxu0 %v413_v1 }
 0x109   :  { %453 = vmatpush.msrb.mxu0 %v411_v4  ;;  %v574_v4 = vld [vmem:[#allocation11 + $0xd8] sm:$0xff] }
 0x10b   :  { %454 = vmatpush.msrb.mxu0 %v409_v7  ;;  %v557_v7 = vld [vmem:[#allocation11 + $0x50] sm:$0xff] }
 0x183   :  { %v289_v2 = vpop.f32.mrf.mxu1 }
 0x184   :  { %v292_v3 = vrot.slane %v289_v2, 4 }
 0x186   :  { %v293_v5 = vadd.f32 %v292_v3, %v289_v2  ;;  %v410_v3 = vld [vmem:[#allocation10 + $0x80] sm:$0xff] }
 0x187   :  { %433 = vmatpush.msra.mxu3 %v410_v3  ;;  %v558_v3 = vld [vmem:[#allocation11 + $0x58] sm:$0xff] }
 0x188   :  { %v294_v8 = vrot.slane %v293_v5, 2 }
 0x189   :  { %434 = vmatpush.msra.mxu3 %v408_v6 }
 0x18a   :  { %v295_v10 = vadd.f32 %v294_v8, %v293_v5 }
 0x18b   :  { %435 = vmatpush.msra.mxu3 %v406_v9 }
 0x18c   :  { %v296_v12 = vrot.slane %v295_v10, 1 }
 0x18e   :  { %v297_v14 = vadd.f32 %v296_v12, %v295_v10  ;;  %v407_v10 = vld [vmem:[#allocation10 + $0x68] sm:$0xff]  ;;  %v404_v12 = vld [vmem:[#allocation10 + $0x50] sm:$0xff] }
 0x18f   :  { %455 = vmatpush.msrb.mxu0 %v407_v10  ;;  %436 = vmatpush.msra.mxu3 %v404_v12  ;;  %v572_v12 = vld [vmem:[#allocation11 + $0xc8] sm:$0xff] }
 0x190   :  { %v298_v16 = vmul.f32 0.125, %v297_v14 }
 0x191   :  { %456 = vmatpush.msrb.mxu0 %v405_v13  ;;  %437 = vmatpush.msra.mxu3 %v402_v15  ;;  %v555_v15 = vld [vmem:[#allocation11 + $0x40] sm:$0xff] }
 0x192   :  { %v299_v18 = vsub.f32 %v289_v2, %v298_v16  ;;  %v403_v16 = vld [vmem:[#allocation10 + $0x48] sm:$0xff] }
 0x193   :  { %457 = vmatpush.msrb.mxu0 %v403_v16  ;;  %v571_v16 = vld [vmem:[#allocation11 + $0xc0] sm:$0xff] }
 0x194   :  { %v300_v20 = vmul.f32 %v299_v18, %v299_v18 }
 0x195   :  { %458 = vmatpush.msrb.mxu0 %v401_v19  ;;  %v554_v19 = vld [vmem:[#allocation11 + $0x38] sm:$0xff] }
 0x196   :  { %v301_v22 = vrot.slane %v300_v20, 4 }
 0x198   :  { %v302_v24 = vadd.f32 %v301_v22, %v300_v20  ;;  %v399_v22 = vld [vmem:[#allocation10 + $0x28] sm:$0xff] }
 0x199   :  { %459 = vmatpush.msrb.mxu0 %v399_v22 }
 0x19a   :  { %v303_v26 = vrot.slane %v302_v24, 2 }
 0x19b   :  { %460 = vmatpush.msrb.mxu0 %v397_v25 }
 0x19c   :  { %v304_v28 = vadd.f32 %v303_v26, %v302_v24  ;;  %v396_v24 = vld [vmem:[#allocation10 + $0x10] sm:$0xff] }
 0x19e   :  { %v305_v30 = vrot.slane %v304_v28, 1 }
 0x1a0   :  { %v306_v31 = vadd.f32 %v305_v30, %v304_v28  ;;  %v395_v28 = vld [vmem:[#allocation10 + $0x8] sm:$0xff] }
 0x1a1   :  { %461 = vmatpush.msrb.mxu0 %v395_v28  ;;  %v568_v28 = vld [vmem:[#allocation11 + $0xa8] sm:$0xff] }
 0x1a2   :  { %v307_v32 = vmul.f32 0.125, %v306_v31 }
 0x1a4   :  { %v310_v33 = vadd.f32 1e-05, %v307_v32 }
 0x1a6   :  { %844 = vrsqrt.f32 %v310_v33  ;;  %vm317_vm4 = vweird.f32 %v310_v33 }
 0x1ac   :  { %v845_v34 = vpop.eup %844 }
 0x1ad   :  { %v312_v35 = vmul.f32 %v845_v34, %v310_v33  ;;  %vm318_vm3 = vweird.f32 %v845_v34 }
 0x1ae   :  { %vm319_vm5 = vmor %vm317_vm4, %vm318_vm3 }
 0x1af   :  { %v313_v36 = vmul.f32 %v845_v34, %v312_v35 }
 0x1b1   :  { %v314_v37 = vmul.f32 0.5, %v313_v36 }
 0x1b3   :  { %v315_v38 = vsub.f32 1.5, %v314_v37 }
 0x1b5   :  { %v316_v40 = vmul.f32 %v845_v34, %v315_v38  ;;  %v377_v38 = vld [vmem:[#allocation16 + $0x2] ss:$0 sm:$0xff] }
 0x1b7   :  { %v320_v41 = vsel %vm319_vm5, %v845_v34, %v316_v40 }
 0x1b8   :  { %v321_v42 = vmul.f32 %v320_v41, %v308_v39 }
 0x1ba   :  { %v322_v44 = vmul.f32 %v321_v42, %v299_v18  ;;  %v400_v18 = vld [vmem:[#allocation10 + $0x30] sm:$0xff] }
 0x1bb   :  { %438 = vmatpush.msra.mxu3 %v400_v18  ;;  %v378_v42 = vld [vmem:[#allocation17 + $0x2] ss:$0 sm:$0xff] }
 0x1bc   :  { %v323_v45 = vadd.f32 %v322_v44, %v309_v43 }
 0x1bd   :  { %439 = vmatpush.msra.mxu3 %v398_v21 }
 0x1be   :  { %v324_v46 = vmax.f32 %v323_v45, 0.0 }
 0x1bf   :  { %440 = vmatpush.msra.mxu3 %v396_v24  ;;  %v569_v24 = vld [vmem:[#allocation11 + $0xb0] sm:$0xff] }
 0x1c0   :  { %357 = vmatmul.f32.vlgmr.msra.gmra.mxu2 %v324_v46 }
 0x1c1   :  { %441 = vmatpush.msra.mxu3 %v394_v27  ;;  %v552_v27 = vld [vmem:[#allocation11 + $0x28] sm:$0xff] }
 0x243   :  { %v358_v51 = vpop.f32.mrf.mxu2 }
 0x244   :  { %v361_v52 = vrot.slane %v358_v51, 4 }
 0x246   :  { %v362_v55 = vadd.f32 %v361_v52, %v358_v51  ;;  %v578_v52 = vld [vmem:[#allocation11 + $0xf8] sm:$0xff] }
 0x247   :  { %599 = vmatpush.msrb.mxu2 %v578_v52 }
 0x248   :  { %v363_v60 = vrot.slane %v362_v55, 2 }
 0x249   :  { %600 = vmatpush.msrb.mxu2 %v577_v56 }
 0x24a   :  { %v364_v63 = vadd.f32 %v363_v60, %v362_v55  ;;  %v561_v55 = vld [vmem:[#allocation11 + $0x70] sm:$0xff]  ;;  %v576_v60 = vld [vmem:[#allocation11 + $0xe8] sm:$0xff] }
 0x24b   :  { %601 = vmatpush.msrb.mxu2 %v576_v60 }
 0x24c   :  { %v365_v2 = vrot.slane %v364_v63, 1 }
 0x24d   :  { %602 = vmatpush.msrb.mxu2 %v575_v0 }
 0x24e   :  { %v366_v5 = vadd.f32 %v365_v2, %v364_v63  ;;  %v559_v63 = vld [vmem:[#allocation11 + $0x60] sm:$0xff] }
 0x24f   :  { %603 = vmatpush.msrb.mxu2 %v574_v4 }
 0x250   :  { %v367_v8 = vmul.f32 0.125, %v366_v5 }
 0x252   :  { %v368_v11 = vsub.f32 %v358_v51, %v367_v8  ;;  %v562_v51 = vld [vmem:[#allocation11 + $0x78] sm:$0xff]  ;;  %v573_v8 = vld [vmem:[#allocation11 + $0xd0] sm:$0xff] }
 0x253   :  { %579 = vmatpush.msrb.mxu1 %v562_v51  ;;  %604 = vmatpush.msrb.mxu2 %v573_v8 }
 0x254   :  { %v369_v14 = vmul.f32 %v368_v11, %v368_v11 }
 0x255   :  { %580 = vmatpush.msrb.mxu1 %v561_v55  ;;  %605 = vmatpush.msrb.mxu2 %v572_v12 }
 0x256   :  { %v370_v17 = vrot.slane %v369_v14, 4 }
 0x257   :  { %581 = vmatpush.msrb.mxu1 %v560_v59  ;;  %606 = vmatpush.msrb.mxu2 %v571_v16  ;;  %v667_v16 = vld [vmem:[#allocation13 + $0x78] sm:$0xff] }
 0x258   :  { %v371_v20 = vadd.f32 %v370_v17, %v369_v14  ;;  %668 = vmatpush.msrb.mxu3 %v667_v16 }
 0x259   :  { %582 = vmatpush.msrb.mxu1 %v559_v63  ;;  %v499_v63 = vld [vmem:[#allocation16 + $0x3] ss:$8 sm:$0x3] }
 0x25a   :  { %v372_v23 = vrot.slane %v371_v20, 2 }
 0x25b   :  { %583 = vmatpush.msrb.mxu1 %v558_v3  ;;  %v501_v3 = vld [vmem:[#allocation17 + $0x3] ss:$8 sm:$0x3] }
 0x25c   :  { %v373_v26 = vadd.f32 %v372_v23, %v371_v20  ;;  %v570_v20 = vld [vmem:[#allocation11 + $0xb8] sm:$0xff]  ;;  %v553_v23 = vld [vmem:[#allocation11 + $0x30] sm:$0xff] }
 0x25d   :  { %584 = vmatpush.msrb.mxu1 %v557_v7  ;;  %607 = vmatpush.msrb.mxu2 %v570_v20  ;;  %v539_v7 = vperm.slane %v501_v3, 0 }
 0x25e   :  { %v374_v29 = vrot.slane %v373_v26, 1 }
 0x25f   :  { %608 = vmatpush.msrb.mxu2 %v569_v24 }
 0x260   :  { %v375_v30 = vadd.f32 %v374_v29, %v373_v26 }
 0x261   :  { %609 = vmatpush.msrb.mxu2 %v568_v28 }
 0x262   :  { %v376_v31 = vmul.f32 0.125, %v375_v30 }
 0x264   :  { %v379_v32 = vadd.f32 1e-05, %v376_v31  ;;  %v551_v31 = vld [vmem:[#allocation11 + $0x20] sm:$0xff] }
 0x266   :  { %846 = vrsqrt.f32 %v379_v32  ;;  %vm386_vm7 = vweird.f32 %v379_v32 }
 0x26c   :  { %v847_v33 = vpop.eup %846 }
 0x26d   :  { %v381_v34 = vmul.f32 %v847_v33, %v379_v32  ;;  %vm387_vm6 = vweird.f32 %v847_v33  ;;  %v567_v32 = vld [vmem:[#allocation11 + $0xa0] sm:$0xff] }
 0x26e   :  { %vm388_vm8 = vmor %vm386_vm7, %vm387_vm6  ;;  %610 = vmatpush.msrb.mxu2 %v567_v32  ;;  %v659_v32 = vld [vmem:[#allocation13 + $0x38] sm:$0xff] }
 0x26f   :  { %v382_v35 = vmul.f32 %v847_v33, %v381_v34 }
 0x271   :  { %v383_v36 = vmul.f32 0.5, %v382_v35  ;;  %v550_v35 = vld [vmem:[#allocation11 + $0x18] sm:$0xff] }
 0x273   :  { %v384_v37 = vsub.f32 1.5, %v383_v36  ;;  %v566_v36 = vld [vmem:[#allocation11 + $0x98] sm:$0xff] }
 0x274   :  { %611 = vmatpush.msrb.mxu2 %v566_v36  ;;  %v657_v36 = vld [vmem:[#allocation13 + $0x28] sm:$0xff] }
 0x275   :  { %v385_v39 = vmul.f32 %v847_v33, %v384_v37 }
 0x277   :  { %v389_v40 = vsel %vm388_vm8, %v847_v33, %v385_v39  ;;  %v549_v39 = vld [vmem:[#allocation11 + $0x10] sm:$0xff] }
 0x278   :  { %v390_v41 = vmul.f32 %v389_v40, %v377_v38  ;;  %v565_v40 = vld [vmem:[#allocation11 + $0x90] sm:$0xff] }
 0x279   :  { %612 = vmatpush.msrb.mxu2 %v565_v40  ;;  %v655_v40 = vld [vmem:[#allocation13 + $0x18] sm:$0xff] }
 0x27a   :  { %v391_v43 = vmul.f32 %v390_v41, %v368_v11  ;;  %v556_v11 = vld [vmem:[#allocation11 + $0x48] sm:$0xff] }
 0x27b   :  { %585 = vmatpush.msrb.mxu1 %v556_v11  ;;  %v548_v41 = vld [vmem:[#allocation11 + $0x8] sm:$0xff] }
 0x27c   :  { %v392_v44 = vadd.f32 %v391_v43, %v378_v42 }
 0x27d   :  { %586 = vmatpush.msrb.mxu1 %v555_v15 }
 0x27e   :  { %v393_v45 = vmax.f32 %v392_v44, 0.0  ;;  %v564_v44 = vld [vmem:[#allocation11 + $0x88] sm:$0xff] }
 0x27f   :  { %587 = vmatpush.msrb.mxu1 %v554_v19  ;;  %613 = vmatpush.msrb.mxu2 %v564_v44  ;;  %v653_v44 = vld [vmem:[#allocation13 + $0x8] sm:$0xff] }
 0x280   :  { %442 = vmatmul.f32.vlgmr.msra.gmra.mxu3 %v393_v45  ;;  %462 = vmatmul.f32.vlgmr.msrb.gmra.mxu0 %v393_v45  ;;  %v547_v45 = vld [vmem:[#allocation11] sm:$0xff] }
 0x281   :  { %588 = vmatpush.msrb.mxu1 %v553_v23  ;;  %v665_v23 = vld [vmem:[#allocation13 + $0x68] sm:$0xff] }
 0x283   :  { %589 = vmatpush.msrb.mxu1 %v552_v27  ;;  %v662_v27 = vld [vmem:[#allocation13 + $0x50] sm:$0xff] }
 0x285   :  { %590 = vmatpush.msrb.mxu1 %v551_v31 }
 0x287   :  { %591 = vmatpush.msrb.mxu1 %v550_v35 }
 0x289   :  { %592 = vmatpush.msrb.mxu1 %v549_v39 }
 0x28b   :  { %593 = vmatpush.msrb.mxu1 %v548_v41 }
 0x28d   :  { %594 = vmatpush.msrb.mxu1 %v547_v45 }
 0x2fd   :  { %v463_v46 = vpop.f32.mrf.mxu0 }
 0x2fe   :  { %v472_v47 = vrot.slane %v463_v46, 4 }
 0x300   :  { %v473_v48 = vadd.f32 %v472_v47, %v463_v46 }
 0x302   :  { %v474_v49 = vrot.slane %v473_v48, 2 }
 0x303   :  { %v443_v50 = vpop.f32.mrf.mxu3 }
 0x304   :  { %v475_v53 = vadd.f32 %v474_v49, %v473_v48  ;;  %v466_v54 = vrot.slane %v443_v50, 4 }
 0x306   :  { %v476_v57 = vrot.slane %v475_v53, 1  ;;  %v467_v58 = vadd.f32 %v466_v54, %v443_v50 }
 0x308   :  { %v477_v61 = vadd.f32 %v476_v57, %v475_v53  ;;  %v468_v62 = vrot.slane %v467_v58, 2 }
 0x30a   :  { %v479_v1 = vmul.f32 0.125, %v477_v61  ;;  %v469_v2 = vadd.f32 %v468_v62, %v467_v58 }
 0x30c   :  { %v1258_v5 = vsub.f32 %v463_v46, %v479_v1  ;;  %v470_v6 = vrot.slane %v469_v2, 1  ;;  %v563_v46 = vld [vmem:[#allocation11 + $0x80] sm:$0xff] }
 0x30d   :  { %614 = vmatpush.msrb.mxu2 %v563_v46  ;;  %v652_v46 = vld [vmem:[#allocation13] sm:$0xff] }
 0x30e   :  { %v483_v9 = vmul.f32 %v1258_v5, %v1258_v5  ;;  %v471_v10 = vadd.f32 %v470_v6, %v469_v2 }
 0x310   :  { %v490_v13 = vrot.slane %v483_v9, 4  ;;  %v478_v14 = vmul.f32 0.125, %v471_v10 }
 0x312   :  { %v491_v17 = vadd.f32 %v490_v13, %v483_v9  ;;  %v1262_v18 = vsub.f32 %v443_v50, %v478_v14  ;;  %v540_v9 = vperm.slane %v501_v3, 1 }
 0x314   :  { %v492_v21 = vrot.slane %v491_v17, 2  ;;  %v482_v22 = vmul.f32 %v1262_v18, %v1262_v18 }
 0x316   :  { %v493_v25 = vadd.f32 %v492_v21, %v491_v17  ;;  %v484_v26 = vrot.slane %v482_v22, 4  ;;  %v666_v21 = vld [vmem:[#allocation13 + $0x70] sm:$0xff] }
 0x317   :  { %669 = vmatpush.msrb.mxu3 %v666_v21 }
 0x318   :  { %v494_v29 = vrot.slane %v493_v25, 1  ;;  %v485_v30 = vadd.f32 %v484_v26, %v482_v22 }
 0x319   :  { %670 = vmatpush.msrb.mxu3 %v665_v23 }
 0x31a   :  { %v495_v33 = vadd.f32 %v494_v29, %v493_v25  ;;  %v486_v34 = vrot.slane %v485_v30, 2  ;;  %v663_v25 = vld [vmem:[#allocation13 + $0x58] sm:$0xff]  ;;  %v661_v29 = vld [vmem:[#allocation13 + $0x48] sm:$0xff] }
 0x31c   :  { %v497_v37 = vmul.f32 0.125, %v495_v33  ;;  %v487_v38 = vadd.f32 %v486_v34, %v485_v30  ;;  %v660_v30 = vld [vmem:[#allocation13 + $0x40] sm:$0xff]  ;;  %v658_v34 = vld [vmem:[#allocation13 + $0x30] sm:$0xff] }
 0x31e   :  { %v503_v42 = vadd.f32 1e-05, %v497_v37  ;;  %v488_v43 = vrot.slane %v487_v38, 1 }
 0x320   :  { %848 = vrsqrt.f32 %v503_v42  ;;  %v489_v47 = vadd.f32 %v488_v43, %v487_v38  ;;  %vm520_vm10 = vweird.f32 %v503_v42  ;;  %v656_v38 = vld [vmem:[#allocation13 + $0x20] sm:$0xff] }
 0x322   :  { %v496_v48 = vmul.f32 0.125, %v489_v47 }
 0x324   :  { %v502_v49 = vadd.f32 1e-05, %v496_v48 }
 0x326   :  { %v849_v50 = vpop.eup %848  ;;  %850 = vrsqrt.f32 %v502_v49  ;;  %vm510_vm13 = vweird.f32 %v502_v49 }
 0x327   :  { %v515_v51 = vmul.f32 %v849_v50, %v503_v42  ;;  %vm521_vm9 = vweird.f32 %v849_v50  ;;  %v654_v42 = vld [vmem:[#allocation13 + $0x10] sm:$0xff] }
 0x328   :  { %vm522_vm11 = vmor %vm520_vm10, %vm521_vm9 }
 0x329   :  { %v516_v52 = vmul.f32 %v849_v50, %v515_v51 }
 0x32b   :  { %v517_v53 = vmul.f32 0.5, %v516_v52 }
 0x32c   :  { %v851_v54 = vpop.eup %850 }
 0x32d   :  { %v518_v55 = vsub.f32 1.5, %v517_v53  ;;  %v505_v56 = vmul.f32 %v851_v54, %v502_v49  ;;  %vm511_vm12 = vweird.f32 %v851_v54 }
 0x32e   :  { %vm512_vm15 = vmor %vm510_vm13, %vm511_vm12 }
 0x32f   :  { %v506_v57 = vmul.f32 %v851_v54, %v505_v56  ;;  %v519_v58 = vmul.f32 %v849_v50, %v518_v55  ;;  %v635_v56 = vld [vmem:[#allocation16 + $0x4] ss:$0 sm:$0xff] }
 0x331   :  { %v507_v59 = vmul.f32 0.5, %v506_v57  ;;  %v523_v61 = vsel %vm522_vm11, %v849_v50, %v519_v58 }
 0x332   :  { %v526_v0 = vrot.slane %v523_v61, 7 }
 0x333   :  { %v508_v60 = vsub.f32 1.5, %v507_v59 }
 0x335   :  { %v509_v62 = vmul.f32 %v851_v54, %v508_v60  ;;  %v636_v60 = vld [vmem:[#allocation17 + $0x4] ss:$0 sm:$0xff] }
 0x337   :  { %v513_v1 = vsel %vm512_vm15, %v851_v54, %v509_v62 }
 0x338   :  { %v528_v2 = vsel %vm527_vm14, %v513_v1, %v526_v0  ;;  %v736_v0 = vld [vmem:[#allocation14 + $0x78] sm:$0xff]  ;;  %v735_v1 = vld [vmem:[#allocation14 + $0x70] sm:$0xff] }
 0x339   :  { %v530_v4 = vmul.f32 %v528_v2, %v499_v63  ;;  %737 = vmatpush.msra.mxu0 %v736_v0 }
 0x33b   :  { %v532_v6 = vperm.slane %v530_v4, 0  ;;  %v533_v8 = vperm.slane %v530_v4, 1  ;;  %738 = vmatpush.msra.mxu0 %v735_v1  ;;  %v734_v4 = vld [vmem:[#allocation14 + $0x68] sm:$0xff] }
 0x33d   :  { %v536_v10 = vmul.f32 %v532_v6, %v1262_v18  ;;  %v537_v11 = vmul.f32 %v533_v8, %v1258_v5  ;;  %v664_v18 = vld [vmem:[#allocation13 + $0x60] sm:$0xff]  ;;  %739 = vmatpush.msra.mxu0 %v734_v4 }
 0x33e   :  { %671 = vmatpush.msrb.mxu3 %v664_v18 }
 0x33f   :  { %v543_v12 = vadd.f32 %v539_v7, %v536_v10  ;;  %v544_v13 = vadd.f32 %v540_v9, %v537_v11  ;;  %v733_v7 = vld [vmem:[#allocation14 + $0x60] sm:$0xff]  ;;  %v732_v9 = vld [vmem:[#allocation14 + $0x58] sm:$0xff]  ;;  %v731_v11 = vld [vmem:[#allocation14 + $0x50] sm:$0xff] }
 0x340   :  { %672 = vmatpush.msrb.mxu3 %v663_v25  ;;  %740 = vmatpush.msra.mxu0 %v733_v7  ;;  %v773_v7 = vld [vmem:[#allocation16 + $0x6] ss:$0 sm:$0xff] }
 0x341   :  { %v545_v14 = vmax.f32 %v543_v12, 0.0  ;;  %v546_v15 = vmax.f32 %v544_v13, 0.0  ;;  %v730_v13 = vld [vmem:[#allocation14 + $0x48] sm:$0xff] }
 0x342   :  { %673 = vmatpush.msrb.mxu3 %v662_v27  ;;  %741 = vmatpush.msra.mxu0 %v732_v9  ;;  %v790_v9 = vlaneseq }
 0x343   :  { %595 = vmatmul.f32.vlgmr.msrb.gmra.mxu1 %v545_v14  ;;  %615 = vmatmul.f32.vlgmr.msrb.gmra.mxu2 %v546_v15  ;;  %v729_v15 = vld [vmem:[#allocation14 + $0x40] sm:$0xff] }
 0x344   :  { %674 = vmatpush.msrb.mxu3 %v661_v29  ;;  %742 = vmatpush.msra.mxu0 %v731_v11 }
 0x346   :  { %675 = vmatpush.msrb.mxu3 %v660_v30  ;;  %743 = vmatpush.msra.mxu0 %v730_v13  ;;  %v721_v30 = vld [vmem:[#allocation14] sm:$0xff]  ;;  %v791_v13 = vand.u32 127, %v790_v9 }
 0x348   :  { %676 = vmatpush.msrb.mxu3 %v659_v32  ;;  %744 = vmatpush.msra.mxu0 %v729_v15  ;;  %vm792_vm9 = vcmp.lt.s32.totalorder %v791_v13, 30 }
 0x34a   :  { %677 = vmatpush.msrb.mxu3 %v658_v34 }
 0x34c   :  { %678 = vmatpush.msrb.mxu3 %v657_v36 }
 0x34e   :  { %679 = vmatpush.msrb.mxu3 %v656_v38 }
 0x350   :  { %680 = vmatpush.msrb.mxu3 %v655_v40 }
 0x352   :  { %681 = vmatpush.msrb.mxu3 %v654_v42 }
 0x354   :  { %682 = vmatpush.msrb.mxu3 %v653_v44 }
 0x356   :  { %683 = vmatpush.msrb.mxu3 %v652_v46 }
 0x3c0   :  { %v596_v17 = vpop.f32.mrf.mxu1 }
 0x3c6   :  { %v616_v19 = vpop.f32.mrf.mxu2 }
 0x3c7   :  { %v617_v20 = vadd.f32 %v616_v19, %v596_v17  ;;  %v728_v17 = vld [vmem:[#allocation14 + $0x38] sm:$0xff] }
 0x3c8   :  { %745 = vmatpush.msra.mxu0 %v728_v17 }
 0x3c9   :  { %v619_v22 = vrot.slane %v617_v20, 4 }
 0x3cb   :  { %v620_v24 = vadd.f32 %v619_v22, %v617_v20  ;;  %v726_v22 = vld [vmem:[#allocation14 + $0x28] sm:$0xff] }
 0x3cd   :  { %v621_v5 = vrot.slane %v620_v24, 2 }
 0x3cf   :  { %v622_v26 = vadd.f32 %v621_v5, %v620_v24  ;;  %v725_v24 = vld [vmem:[#allocation14 + $0x20] sm:$0xff]  ;;  %v724_v5 = vld [vmem:[#allocation14 + $0x18] sm:$0xff] }
 0x3d1   :  { %v623_v28 = vrot.slane %v622_v26, 1 }
 0x3d3   :  { %v624_v31 = vadd.f32 %v623_v28, %v622_v26  ;;  %v723_v26 = vld [vmem:[#allocation14 + $0x10] sm:$0xff]  ;;  %v722_v28 = vld [vmem:[#allocation14 + $0x8] sm:$0xff] }
 0x3d5   :  { %v625_v33 = vmul.f32 0.125, %v624_v31 }
 0x3d7   :  { %v626_v35 = vsub.f32 %v617_v20, %v625_v33  ;;  %v727_v20 = vld [vmem:[#allocation14 + $0x30] sm:$0xff] }
 0x3d8   :  { %746 = vmatpush.msra.mxu0 %v727_v20 }
 0x3d9   :  { %v627_v37 = vmul.f32 %v626_v35, %v626_v35 }
 0x3da   :  { %747 = vmatpush.msra.mxu0 %v726_v22 }
 0x3db   :  { %v628_v39 = vrot.slane %v627_v37, 4 }
 0x3dc   :  { %748 = vmatpush.msra.mxu0 %v725_v24 }
 0x3dd   :  { %v629_v41 = vadd.f32 %v628_v39, %v627_v37  ;;  %v704_v39 = vld [vmem:[#allocation16 + $0x5] ss:$0 sm:$0xff] }
 0x3de   :  { %749 = vmatpush.msra.mxu0 %v724_v5 }
 0x3df   :  { %v630_v43 = vrot.slane %v629_v41, 2 }
 0x3e0   :  { %750 = vmatpush.msra.mxu0 %v723_v26 }
 0x3e1   :  { %v631_v45 = vadd.f32 %v630_v43, %v629_v41  ;;  %v705_v43 = vld [vmem:[#allocation17 + $0x5] ss:$0 sm:$0xff] }
 0x3e2   :  { %751 = vmatpush.msra.mxu0 %v722_v28 }
 0x3e3   :  { %v632_v47 = vrot.slane %v631_v45, 1 }
 0x3e4   :  { %752 = vmatpush.msra.mxu0 %v721_v30 }
 0x3e5   :  { %v633_v48 = vadd.f32 %v632_v47, %v631_v45 }
 0x3e7   :  { %v634_v49 = vmul.f32 0.125, %v633_v48 }
 0x3e9   :  { %v637_v50 = vadd.f32 1e-05, %v634_v49 }
 0x3eb   :  { %852 = vrsqrt.f32 %v637_v50  ;;  %vm644_vm1 = vweird.f32 %v637_v50 }
 0x3f1   :  { %v853_v51 = vpop.eup %852 }
 0x3f2   :  { %v639_v52 = vmul.f32 %v853_v51, %v637_v50  ;;  %vm645_vm0 = vweird.f32 %v853_v51 }
 0x3f3   :  { %vm646_vm2 = vmor %vm644_vm1, %vm645_vm0 }
 0x3f4   :  { %v640_v53 = vmul.f32 %v853_v51, %v639_v52 }
 0x3f6   :  { %v641_v54 = vmul.f32 0.5, %v640_v53 }
 0x3f8   :  { %v642_v55 = vsub.f32 1.5, %v641_v54 }
 0x3fa   :  { %v643_v57 = vmul.f32 %v853_v51, %v642_v55 }
 0x3fc   :  { %v647_v58 = vsel %vm646_vm2, %v853_v51, %v643_v57 }
 0x3fd   :  { %v648_v59 = vmul.f32 %v647_v58, %v635_v56 }
 0x3ff   :  { %v649_v61 = vmul.f32 %v648_v59, %v626_v35 }
 0x401   :  { %v650_v62 = vadd.f32 %v649_v61, %v636_v60 }
 0x403   :  { %v651_v63 = vmax.f32 %v650_v62, 0.0 }
 0x405   :  { %684 = vmatmul.f32.vlgmr.msrb.gmra.mxu3 %v651_v63 }
 0x488   :  { %v685_v2 = vpop.f32.mrf.mxu3 }
 0x489   :  { %v688_v3 = vrot.slane %v685_v2, 4 }
 0x48b   :  { %v689_v6 = vadd.f32 %v688_v3, %v685_v2 }
 0x48d   :  { %v690_v8 = vrot.slane %v689_v6, 2 }
 0x48f   :  { %v691_v10 = vadd.f32 %v690_v8, %v689_v6 }
 0x491   :  { %v692_v12 = vrot.slane %v691_v10, 1 }
 0x493   :  { %v693_v14 = vadd.f32 %v692_v12, %v691_v10  ;;  %v774_v12 = vld [vmem:[#allocation17 + $0x6] ss:$0 sm:$0xff] }
 0x495   :  { %v694_v16 = vmul.f32 0.125, %v693_v14 }
 0x497   :  { %v695_v19 = vsub.f32 %v685_v2, %v694_v16 }
 0x499   :  { %v696_v21 = vmul.f32 %v695_v19, %v695_v19 }
 0x49b   :  { %v697_v23 = vrot.slane %v696_v21, 4 }
 0x49d   :  { %v698_v18 = vadd.f32 %v697_v23, %v696_v21 }
 0x49f   :  { %v699_v25 = vrot.slane %v698_v18, 2 }
 0x4a1   :  { %v700_v27 = vadd.f32 %v699_v25, %v698_v18 }
 0x4a3   :  { %v701_v29 = vrot.slane %v700_v27, 1 }
 0x4a5   :  { %v702_v31 = vadd.f32 %v701_v29, %v700_v27 }
 0x4a7   :  { %v703_v32 = vmul.f32 0.125, %v702_v31 }
 0x4a9   :  { %v706_v33 = vadd.f32 1e-05, %v703_v32 }
 0x4ab   :  { %854 = vrsqrt.f32 %v706_v33  ;;  %vm713_vm4 = vweird.f32 %v706_v33 }
 0x4b1   :  { %v855_v34 = vpop.eup %854 }
 0x4b2   :  { %v708_v35 = vmul.f32 %v855_v34, %v706_v33  ;;  %vm714_vm3 = vweird.f32 %v855_v34 }
 0x4b3   :  { %vm715_vm5 = vmor %vm713_vm4, %vm714_vm3 }
 0x4b4   :  { %v709_v36 = vmul.f32 %v855_v34, %v708_v35 }
 0x4b6   :  { %v710_v37 = vmul.f32 0.5, %v709_v36 }
 0x4b8   :  { %v711_v38 = vsub.f32 1.5, %v710_v37 }
 0x4ba   :  { %v712_v40 = vmul.f32 %v855_v34, %v711_v38 }
 0x4bc   :  { %v716_v41 = vsel %vm715_vm5, %v855_v34, %v712_v40 }
 0x4bd   :  { %v717_v42 = vmul.f32 %v716_v41, %v704_v39 }
 0x4bf   :  { %v718_v44 = vmul.f32 %v717_v42, %v695_v19 }
 0x4c1   :  { %v719_v45 = vadd.f32 %v718_v44, %v705_v43 }
 0x4c3   :  { %v720_v46 = vmax.f32 %v719_v45, 0.0 }
 0x4c5   :  { %753 = vmatmul.f32.vlgmr.msra.gmra.mxu0 %v720_v46 }
 0x542   :  { %v754_v47 = vpop.f32.mrf.mxu0 }
 0x543   :  { %v757_v48 = vrot.slane %v754_v47, 4 }
 0x545   :  { %v758_v49 = vadd.f32 %v757_v48, %v754_v47 }
 0x547   :  { %v759_v50 = vrot.slane %v758_v49, 2 }
 0x549   :  { %v760_v51 = vadd.f32 %v759_v50, %v758_v49 }
 0x54b   :  { %v761_v52 = vrot.slane %v760_v51, 1 }
 0x54d   :  { %v762_v53 = vadd.f32 %v761_v52, %v760_v51 }
 0x54f   :  { %v763_v54 = vmul.f32 0.125, %v762_v53 }
 0x551   :  { %v764_v55 = vsub.f32 %v754_v47, %v763_v54 }
 0x553   :  { %v765_v56 = vmul.f32 %v764_v55, %v764_v55 }
 0x555   :  { %v766_v57 = vrot.slane %v765_v56, 4 }
 0x557   :  { %v767_v58 = vadd.f32 %v766_v57, %v765_v56 }
 0x559   :  { %v768_v59 = vrot.slane %v767_v58, 2 }
 0x55b   :  { %v769_v60 = vadd.f32 %v768_v59, %v767_v58 }
 0x55d   :  { %v770_v61 = vrot.slane %v769_v60, 1 }
 0x55f   :  { %v771_v62 = vadd.f32 %v770_v61, %v769_v60 }
 0x561   :  { %v772_v63 = vmul.f32 0.125, %v771_v62 }
 0x563   :  { %v775_v0 = vadd.f32 1e-05, %v772_v63 }
 0x565   :  { %856 = vrsqrt.f32 %v775_v0  ;;  %vm782_vm7 = vweird.f32 %v775_v0 }
 0x56b   :  { %v857_v1 = vpop.eup %856 }
 0x56c   :  { %v777_v2 = vmul.f32 %v857_v1, %v775_v0  ;;  %vm783_vm6 = vweird.f32 %v857_v1 }
 0x56d   :  { %vm784_vm8 = vmor %vm782_vm7, %vm783_vm6 }
 0x56e   :  { %v778_v3 = vmul.f32 %v857_v1, %v777_v2 }
 0x570   :  { %v779_v4 = vmul.f32 0.5, %v778_v3 }
 0x572   :  { %v780_v6 = vsub.f32 1.5, %v779_v4 }
 0x574   :  { %v781_v8 = vmul.f32 %v857_v1, %v780_v6 }
 0x576   :  { %v785_v10 = vsel %vm784_vm8, %v857_v1, %v781_v8 }
 0x577   :  { %v786_v11 = vmul.f32 %v785_v10, %v773_v7 }
 0x579   :  { %v787_v14 = vmul.f32 %v786_v11, %v764_v55 }
 0x57b   :  { %v788_v15 = vadd.f32 %v787_v14, %v774_v12 }
 0x57d   :  { %v789_v16 = vmax.f32 %v788_v15, 0.0 }
 0x57f   :  { %v793_v17 = vsel %vm792_vm9, %v789_v16, -1e+30 }
 0x580   :  { %794 = vmax.xlane.f32.xlu0 %v793_v17 }
 0x5f3   :  { %v795_v19 = vpop.xlane.xlu0 %794 }
 0x5f4   :  { %v796_v20 = vsub.f32 %v793_v17, %v795_v19 }
 0x5f6   :  { %v797_v21 = vmul.f32 1.442695, %v796_v20 }
 0x5f8   :  { %858 = vpow2.f32 %v797_v21 }
 0x5fe   :  { %v859_v22 = vpop.eup %858 }
 0x5ff   :  { %799 = vadd.xlane.f32.xlu0 %v859_v22 }
 0x672   :  { %v800_v23 = vpop.xlane.xlu0 %799 }
 0x673   :  { %860 = vlog2.f32 %v800_v23 }
 0x679   :  { %v861_v24 = vpop.eup %860 }
 0x67a   :  { %v802_v18 = vmul.f32 0.6931472, %v861_v24 }
 0x67c   :  { %v803_v5 = vsub.f32 %v796_v20, %v802_v18 }
 0x67e   :  { %804 = vst [vmem:[#allocation19] sm:$0xff] %v803_v5 }
 0x67f   :  { %815 = dma.vmem_to_hbm [thread:$0]  %s811_s9, 128, %s813_s17, [#allocation4]  }
 0x680   :  { %1138 = dma.done.wait [#allocation4], 128  }
 0x681   :  { %1139 = vsyncadd [#allocation4], 4294967168 }
 0x682   :  { %820 = vsyncpa [#allocation3], 1 }
 0x683   :  { %821 = vsyncpa [#allocation6], 1 }
 0x684   :  { %822 = vsyncpa [#allocation9], 1 }
 0x685   :  { %823 = vsyncpa [#allocation12], 1 }
 0x686   :  { %824 = vsyncpa [#allocation15], 1 }
 0x687   :  { %825 = vsyncpa [#allocation18], 1 }
 0x688   :  { %826 = vsyncpa [#allocation4], 1 }

</bundles_post_ra>
